<compile_context>
chip_gen: v5e
topology: v5e:2x2
jax: 0.10.0
libtpu: 0.0.40
codegen_flags: <defaults>
</compile_context>

<pallas_src>
import functools
import numpy as np

import jax
import jax.numpy as jnp
from jax.experimental import pallas as pl
from jax.experimental.pallas import tpu as pltpu


# ------------------------------ Pallas kernel ------------------------------

def _fused_block_kernel(*refs, cin, hout, wout, conv1_in_kernel, sc_off,
                        use_iota_mask):
    """Whole basic block in one kernel, transposed (channels, M) layout.

    refs (in order):
      x_ref  : (Cin, m) bf16 if conv1_in_kernel (stride-1 block),
               else (9*Cin, m) bf16 wrapper-built im2col patches (stride-2).
      w1_ref : (P1p, 9*Cin)    bf16  conv1 weights, bn1 scale folded, row-padded
      b1_ref : (P1p, 1)        f32   bn1 bias (padded rows 0)
      w2_ref : (planes, 9*P1p) bf16  conv2 weights, bn2 scale + masks[1]
                                     channel scatter folded, in-chans padded
      b2_ref : (planes, 1)     f32   bn2 bias scattered (pruned positions 0)
      [msk_ref: (9, m) f32]    only when use_iota_mask == False
      o_ref  : (planes, m)     block output (transposed layout)
    """
    if use_iota_mask:
        x_ref, w1_ref, b1_ref, w2_ref, b2_ref, o_ref = refs
        msk_ref = None
    else:
        x_ref, w1_ref, b1_ref, w2_ref, b2_ref, msk_ref, o_ref = refs

    planes, m = o_ref.shape

    # ---- 9-tap validity masks ----------------------------------------------
    # Tile columns are (image, h, w) with w fastest and the tile holds WHOLE
    # images (m % (hout*wout) == 0), so in-image coordinates come from
    # shift/and on a lane iota when hout, wout are powers of two.
    if use_iota_mask:
        idx = jax.lax.broadcasted_iota(jnp.int32, (1, m), 1)
        log2w = wout.bit_length() - 1
        ww = jnp.bitwise_and(idx, wout - 1)            # w = idx % wout
        hh = jnp.bitwise_and(idx >> log2w, hout - 1)   # h = (idx // wout) % hout

    def tap_valid(ky, kx):
        """(1, m) bool: is tap (ky,kx) of a 3x3/pad=1 window in range?
        Returns None when the tap is always valid (centre row & column)."""
        if use_iota_mask:
            conds = []
            if ky == 0:
                conds.append(hh > 0)
            if ky == 2:
                conds.append(hh < hout - 1)
            if kx == 0:
                conds.append(ww > 0)
            if kx == 2:
                conds.append(ww < wout - 1)
            if not conds:
                return None
            ok = conds[0]
            for c in conds[1:]:
                ok = jnp.logical_and(ok, c)
            return ok
        k = ky * 3 + kx
        if k == 4:
            return None
        return msk_ref[k:k + 1, :] != 0.0

    def roll_gather(a):
        """In-kernel im2col of a 3x3/pad=1/stride=1 conv on the VMEM-resident
        slab `a` (C, m) f32 -> (9*C, m) bf16 tap-major patches.

        Each tap is a static lane rotation (XLU, free slot) of the flattened
        (image, h, w) axis.  CORRECTNESS NOTE (review): every rotation that
        wraps across a row, image, or tile boundary is exactly an (h, w)
        out-of-range tap and is zeroed by the validity mask BEFORE the matmul,
        so wrap-around values never contaminate the result.  Slab row order
        k*C + c must stay in lock-step with the weight column order built in
        __init__ (tap-major, channel-minor).
        """
        slabs = []
        for k in range(9):
            ky, kx = divmod(k, 3)
            off = (ky - 1) * wout + (kx - 1)               # static int
            shifted = pltpu.roll(a, shift=(-off) % m, axis=1) if off else a
            ok = tap_valid(ky, kx)
            if ok is not None:
                # Mask in f32 (v5e has no bf16 VALU), cast per-slab to bf16 so
                # the concat / second-matmul operand is half-width.
                shifted = jnp.where(ok, shifted, 0.0)
            slabs.append(shifted.astype(jnp.bfloat16))
        return jnp.concatenate(slabs, axis=0)

    # ---- conv1 (+ bn1 + ReLU) and the in-kernel shortcut source -------------
    if conv1_in_kernel:
        # stride == 1: x_ref is (Cin, m); im2col in-kernel, shortcut = x.
        x32 = x_ref[...].astype(jnp.float32)
        patches1 = roll_gather(x32)                       # (9*Cin, m) bf16
        sc = x32                                          # identity shortcut
    else:
        # stride == 2: x_ref holds wrapper-built im2col patches; the
        # LambdaLayer shortcut x[:, ::2, ::2, :] is exactly the centre tap.
        patches1 = x_ref[...]
        sc = x_ref[pl.ds(4 * cin, cin), :].astype(jnp.float32)

    o1 = jnp.dot(w1_ref[...], patches1, preferred_element_type=jnp.float32)
    o1 = jnp.maximum(o1 + b1_ref[...], 0.0)               # (P1p, m) f32

    # ---- conv2 (+ bn2, masks[1] scatter folded into w2) ---------------------
    patches2 = roll_gather(o1)                            # (9*P1p, m) bf16
    o2 = jnp.dot(w2_ref[...], patches2, preferred_element_type=jnp.float32)
    o2 = o2 + b2_ref[...]

    # ---- shortcut add into channel rows [sc_off, sc_off+Cin) + final ReLU ---
    parts = []
    if sc_off > 0:
        parts.append(jnp.zeros((sc_off, m), jnp.float32))
    parts.append(sc)
    bot = planes - sc_off - cin
    if bot > 0:
        parts.append(jnp.zeros((bot, m), jnp.float32))
    sc_full = parts[0] if len(parts) == 1 else jnp.concatenate(parts, axis=0)
    o_ref[...] = jnp.maximum(o2 + sc_full, 0.0).astype(o_ref.dtype)


# ------------------------------- glue helpers ------------------------------

def _im2col_t(x_nhwc, stride):
    """Transposed im2col for a 3x3/pad=1 conv: (9*Cin, N*Ho*Wo).
    Only used for stride-2 blocks (stride-1 im2col is done in-kernel)."""
    n, h, w, c = x_nhwc.shape
    hout = (h + 2 - 3) // stride + 1
    wout = (w + 2 - 3) // stride + 1
    xp = jnp.pad(x_nhwc, ((0, 0), (1, 1), (1, 1), (0, 0)))
    slabs = []
    for ky in range(3):
        for kx in range(3):
            slabs.append(xp[:, ky:ky + stride * hout:stride,
                            kx:kx + stride * wout:stride, :])
    pat = jnp.stack(slabs, axis=0)                  # (9, N, Ho, Wo, C)
    pat = jnp.transpose(pat, (0, 4, 1, 2, 3))       # (9, C, N, Ho, Wo)
    return pat.reshape(9 * c, n * hout * wout), hout, wout


def _tap_masks(n_imgs, hout, wout):
    """(9, n_imgs*Ho*Wo) f32 validity masks -- fallback for non-power-of-two
    spatial sizes (the common CIFAR case builds them in-kernel via iota)."""
    masks = np.zeros((9, n_imgs * hout * wout), np.float32)
    hh, ww = np.meshgrid(np.arange(hout), np.arange(wout), indexing="ij")
    for k in range(9):
        ky, kx = divmod(k, 3)
        valid = ((hh + ky - 1 >= 0) & (hh + ky - 1 < hout) &
                 (ww + kx - 1 >= 0) & (ww + kx - 1 < wout))
        masks[k] = np.tile(valid.astype(np.float32).reshape(-1), n_imgs)
    return masks


def _is_pow2(v):
    return v >= 1 and (v & (v - 1)) == 0


def _fold_bn(gamma, beta, mean, var, eps=1e-5):
    scale = gamma / jnp.sqrt(var + eps)
    bias = beta - mean * scale
    return scale, bias


# --------------------------- module implementation --------------------------

class ResBasicBlockPrunedPallas:
    """Pallas port of ResBasicBlock_pruned (BatchNorm in inference mode)."""

    def __init__(self, inplanes, planes, masks, stride=1, key=None,
                 out_dtype=jnp.float32):
        if stride not in (1, 2):
            raise NotImplementedError("only stride 1 or 2 is supported")
        if stride == 1 and inplanes != planes:
            raise NotImplementedError(
                "stride-1 block requires inplanes == planes (the original "
                "module's shortcut would be shape-mismatched otherwise)")
        if stride == 2 and inplanes + 2 * (planes // 4) != planes:
            raise NotImplementedError("shortcut channel padding mismatch")

        self.inplanes, self.planes, self.stride = inplanes, planes, stride
        self.out_dtype = out_dtype                      # set bf16 to feed a
                                                        # following block in bf16
        mask1 = np.asarray(masks[0], np.float32)
        mask2 = np.asarray(masks[1], np.float32)
        p1, p2 = int(mask1.sum()), int(mask2.sum())
        self.p1, self.p2 = p1, p2
        self.idx2 = np.nonzero(mask2)[0]

        if key is None:
            key = jax.random.PRNGKey(42)
        ks = jax.random.split(key, 10)

        # conv1 HWIO (3,3,Cin,p1) + bn1 params.
        w1 = 0.1 * jax.random.normal(ks[0], (3, 3, inplanes, p1), jnp.float32)
        g1 = 1.0 + 0.1 * jax.random.normal(ks[1], (p1,), jnp.float32)
        be1 = 0.1 * jax.random.normal(ks[2], (p1,), jnp.float32)
        m1 = 0.05 * jax.random.normal(ks[3], (p1,), jnp.float32)
        v1 = jax.random.uniform(ks[4], (p1,), jnp.float32, 0.5, 1.5)
        s1, b1 = _fold_bn(g1, be1, m1, v1)

        # conv2 HWIO (3,3,p1,p2) + bn2 params.
        w2 = 0.1 * jax.random.normal(ks[5], (3, 3, p1, p2), jnp.float32)
        g2 = 1.0 + 0.1 * jax.random.normal(ks[6], (p2,), jnp.float32)
        be2 = 0.1 * jax.random.normal(ks[7], (p2,), jnp.float32)
        m2 = 0.05 * jax.random.normal(ks[8], (p2,), jnp.float32)
        v2 = jax.random.uniform(ks[9], (p2,), jnp.float32, 0.5, 1.5)
        s2, b2 = _fold_bn(g2, be2, m2, v2)

        # Fold BN scale into the conv weights (inference mode), cast to bf16.
        self.w1_bf = (w1 * s1).astype(jnp.bfloat16)     # (3,3,Cin,p1)
        self.bias1 = b1                                 # (p1,)
        self.w2_bf = (w2 * s2).astype(jnp.bfloat16)     # (3,3,p1,p2)
        self.bias2 = b2                                 # (p2,)

        # ---- kernel-layout constants (transposed, sublane-padded) ----------
        p1_pad = -(-p1 // 8) * 8                        # round up to 8 sublanes
        self.p1_pad = p1_pad
        k1 = 9 * inplanes

        # conv1: (p1_pad, 9*Cin), column index = tap*Cin + in_chan.
        w1t = jnp.transpose(self.w1_bf.reshape(9, inplanes, p1),
                            (2, 0, 1)).reshape(p1, k1)
        self.w1t = jnp.zeros((p1_pad, k1), jnp.bfloat16).at[:p1].set(w1t)
        self.b1_col = jnp.zeros((p1_pad, 1), jnp.float32).at[:p1, 0].set(b1)

        # conv2: scatter p2 -> planes (masks[1], static) and pad p1 -> p1_pad
        # per tap.  Column index = tap*p1_pad + in_chan (tap-major, chan-minor)
        # -- MUST stay in lock-step with roll_gather's slab concat order.
        w2t = jnp.transpose(self.w2_bf.reshape(9, p1, p2), (2, 0, 1))  # (p2,9,p1)
        w2t_full = jnp.zeros((planes, 9, p1_pad), jnp.bfloat16)
        w2t_full = w2t_full.at[self.idx2, :, :p1].set(w2t)
        self.w2t = w2t_full.reshape(planes, 9 * p1_pad)
        self.b2_col = jnp.zeros((planes, 1), jnp.float32).at[self.idx2, 0].set(b2)

        assert self.w1t.shape == (p1_pad, 9 * inplanes)
        assert self.w2t.shape == (planes, 9 * p1_pad)

    # Shortcut helper (reference only; the kernel derives it from the patches).
    def _shortcut_nhwc(self, x_nhwc):
        if self.stride != 1 or self.inplanes != self.planes:
            sc = x_nhwc[:, ::2, ::2, :]
            pad = self.planes // 4
            return jnp.pad(sc, ((0, 0), (0, 0), (0, 0), (pad, pad)))
        return x_nhwc

    def __call__(self, x_nhwc):
        n, h, w, c = x_nhwc.shape
        assert c == self.inplanes

        if self.stride == 1:
            hout, wout = h, w
            rows_in = self.inplanes
            kernel_in = jnp.transpose(x_nhwc, (3, 0, 1, 2)) \
                           .reshape(rows_in, n * h * w).astype(jnp.bfloat16)
        else:
            patches1, hout, wout = _im2col_t(x_nhwc, self.stride)
            rows_in = 9 * self.inplanes
            kernel_in = patches1.astype(jnp.bfloat16)

        img = hout * wout
        m = n * img

        # Lane tiling: whole images per grid step, >=256 lanes per step where
        # possible (fills the 256-wide MXUs, lets both v7x TCs run), tile
        # width a multiple of 128 so output stores are unmasked vst.  Small M
        # (e.g. the stride-2 CIFAR block, M=128) stays a single grid step.
        imgs_per_tile = n
        if m > 256:
            ipt = max(1, -(-256 // img))
            while ipt < n and (n % ipt != 0 or (ipt * img) % 128 != 0):
                ipt += 1
            if n % ipt == 0 and (ipt * img) % 128 == 0:
                imgs_per_tile = ipt
        tile_m = imgs_per_tile * img
        num_tiles = m // tile_m

        use_iota = _is_pow2(hout) and _is_pow2(wout)
        sc_off = 0 if (self.stride == 1 and self.inplanes == self.planes) \
            else self.planes // 4

        kern = functools.partial(
            _fused_block_kernel, cin=self.inplanes, hout=hout, wout=wout,
            conv1_in_kernel=(self.stride == 1), sc_off=sc_off,
            use_iota_mask=use_iota)

        in_specs = [
            pl.BlockSpec((rows_in, tile_m), lambda i: (0, i)),
            pl.BlockSpec((self.p1_pad, 9 * self.inplanes), lambda i: (0, 0)),
            pl.BlockSpec((self.p1_pad, 1), lambda i: (0, 0)),
            pl.BlockSpec((self.planes, 9 * self.p1_pad), lambda i: (0, 0)),
            pl.BlockSpec((self.planes, 1), lambda i: (0, 0)),
        ]
        operands = [kernel_in, self.w1t, self.b1_col, self.w2t, self.b2_col]
        if not use_iota:
            # Fallback for non-power-of-two spatial sizes: one small mask DMA.
            msk = jnp.asarray(_tap_masks(imgs_per_tile, hout, wout))
            in_specs.append(pl.BlockSpec((9, tile_m), lambda i: (0, 0)))
            operands.append(msk)

        out_t = pl.pallas_call(
            kern,
            out_shape=jax.ShapeDtypeStruct((self.planes, m), self.out_dtype),
            grid=(num_tiles,),
            in_specs=in_specs,
            out_specs=pl.BlockSpec((self.planes, tile_m), lambda i: (0, i)),
            compiler_params=pltpu.CompilerParams(
                dimension_semantics=("parallel",)),
        )(*operands)

        out = out_t.reshape(self.planes, n, hout, wout)
        return jnp.transpose(out, (1, 2, 3, 0))                 # NHWC

    # Pure-JAX reference reproducing the PyTorch forward (conv -> bn -> relu
    # -> conv -> bn -> channel scatter -> + shortcut -> relu), using the same
    # folded/bf16 weights so the comparison isolates kernel correctness.
    def reference(self, x_nhwc):
        def conv(x, w, s):
            return jax.lax.conv_general_dilated(
                x.astype(jnp.bfloat16), w, (s, s), ((1, 1), (1, 1)),
                dimension_numbers=('NHWC', 'HWIO', 'NHWC'),
                preferred_element_type=jnp.float32)

        o = conv(x_nhwc, self.w1_bf, self.stride) + self.bias1
        o = jnp.maximum(o, 0.0)
        o = conv(o, self.w2_bf, 1) + self.bias2
        n, ho, wo, _ = o.shape
        padded = jnp.zeros((n, ho, wo, self.planes), o.dtype)
        padded = padded.at[..., self.idx2].set(o)
        padded = padded + self._shortcut_nhwc(x_nhwc)
        return jnp.maximum(padded, 0.0)


# ----------------------------------- main -----------------------------------

if __name__ == "__main__":
    N, H, W = 2, 16, 16

    # ---- block 1: downsampling block (stride 2, 8 -> 16 channels), M = 128 --
    mask1 = np.array([1, 1, 0, 1, 1, 1, 0, 1, 1, 1, 1, 0, 1, 1, 0, 1], np.float32)  # 12 kept
    mask2 = np.array([1, 0, 1, 1, 0, 1, 1, 1, 0, 1, 1, 0, 1, 0, 1, 1], np.float32)  # 11 kept
    blk_down = ResBasicBlockPrunedPallas(8, 16, (mask1, mask2), stride=2,
                                         key=jax.random.PRNGKey(7))
    x1_nchw = jax.random.normal(jax.random.PRNGKey(0), (N, 8, H, W), jnp.float32)
    x1 = jnp.transpose(x1_nchw, (0, 2, 3, 1))                    # NHWC
    out1 = jax.block_until_ready(jax.jit(blk_down.__call__)(x1))
    ref1 = jax.block_until_ready(blk_down.reference(x1))
    np.testing.assert_allclose(np.asarray(out1), np.asarray(ref1),
                               rtol=2e-2, atol=2e-2)

    # ---- block 2: identity block (stride 1, 16 -> 16 channels), M = 512 -----
    # conv1 im2col + shortcut fully in-kernel; M tiled into two 256-lane
    # parallel grid steps.
    mask1b = np.array([1, 1, 1, 0, 1, 1, 1, 1, 0, 1, 1, 1, 1, 0, 1, 1], np.float32)  # 13 kept
    mask2b = np.array([1, 1, 0, 1, 1, 1, 0, 1, 1, 1, 1, 1, 0, 1, 1, 0], np.float32)  # 12 kept
    blk_id = ResBasicBlockPrunedPallas(16, 16, (mask1b, mask2b), stride=1,
                                       key=jax.random.PRNGKey(11))
    x2_nchw = jax.random.normal(jax.random.PRNGKey(1), (N, 16, H, W), jnp.float32)
    x2 = jnp.transpose(x2_nchw, (0, 2, 3, 1))                    # NHWC
    out2 = jax.block_until_ready(jax.jit(blk_id.__call__)(x2))
    ref2 = jax.block_until_ready(blk_id.reference(x2))
    np.testing.assert_allclose(np.asarray(out2), np.asarray(ref2),
                               rtol=2e-2, atol=2e-2)

    # TODO(synk): BatchNorm is implemented in inference mode (running stats
    # folded into scale/bias); training-mode batch statistics are not computed
    # in-kernel.
    print("KERNEL_OK")
</pallas_src>

<mosaic_0001>
module attributes {stable_mosaic.version = 11 : i64} {
  func.func @_fused_block_kernel(%arg0: i32, %arg1: memref<72x128xbf16, #tpu.memory_space<vmem>>, %arg2: memref<16x72xbf16, #tpu.memory_space<vmem>>, %arg3: memref<16x1xf32, #tpu.memory_space<vmem>>, %arg4: memref<16x144xbf16, #tpu.memory_space<vmem>>, %arg5: memref<16x1xf32, #tpu.memory_space<vmem>>, %arg6: memref<16x128xf32, #tpu.memory_space<vmem>>) attributes {dimension_semantics = [#tpu.dimension_semantics<parallel>], iteration_bounds = array<i64: 1>, scalar_prefetch = 0 : i64, scratch_operands = 0 : i64, tpu.core_type = #tpu.core_type<tc>, window_params = [{transform_indices = @transform_0, window_bounds = array<i64: 72, 128>}, {pipeline_mode = #tpu.pipeline_mode<synchronous>, transform_indices = @transform_1, window_bounds = array<i64: 16, 72>}, {pipeline_mode = #tpu.pipeline_mode<synchronous>, transform_indices = @transform_2, window_bounds = array<i64: 16, 1>}, {pipeline_mode = #tpu.pipeline_mode<synchronous>, transform_indices = @transform_3, window_bounds = array<i64: 16, 144>}, {pipeline_mode = #tpu.pipeline_mode<synchronous>, transform_indices = @transform_4, window_bounds = array<i64: 16, 1>}, {transform_indices = @transform_5, window_bounds = array<i64: 16, 128>}]} {
    %0 = tpu.iota {dimensions = array<i32: 1>} : vector<1x128xi32>
    %c7_i32 = arith.constant 7 : i32
    %1 = vector.broadcast %c7_i32 : i32 to vector<1x128xi32>
    %2 = arith.andi %0, %1 : vector<1x128xi32>
    %c3_i32 = arith.constant 3 : i32
    %3 = vector.broadcast %c3_i32 : i32 to vector<1x128xi32>
    %4 = arith.shrsi %0, %3 : vector<1x128xi32>
    %c7_i32_0 = arith.constant 7 : i32
    %5 = vector.broadcast %c7_i32_0 : i32 to vector<1x128xi32>
    %6 = arith.andi %4, %5 : vector<1x128xi32>
    %c0 = arith.constant 0 : index
    %c0_1 = arith.constant 0 : index
    %7 = vector.load %arg1[%c0, %c0_1] : memref<72x128xbf16, #tpu.memory_space<vmem>>, vector<72x128xbf16>
    %c32 = arith.constant 32 : index
    %c0_2 = arith.constant 0 : index
    %8 = vector.load %arg1[%c32, %c0_2] : memref<72x128xbf16, #tpu.memory_space<vmem>>, vector<8x128xbf16>
    %9 = arith.extf %8 : vector<8x128xbf16> to vector<8x128xf32>
    %c0_3 = arith.constant 0 : index
    %c0_4 = arith.constant 0 : index
    %10 = vector.load %arg2[%c0_3, %c0_4] : memref<16x72xbf16, #tpu.memory_space<vmem>>, vector<16x72xbf16>
    %cst = arith.constant dense<0.000000e+00> : vector<16x128xf32>
    %11 = tpu.matmul %10, %7, %cst {dimension_numbers = #tpu.dot_dimension_numbers<[1], [0], [0], [1], [0, 0, 1, 1], [], []>} : vector<16x72xbf16>, vector<72x128xbf16>, vector<16x128xf32> -> vector<16x128xf32>
    %c0_5 = arith.constant 0 : index
    %c0_6 = arith.constant 0 : index
    %12 = vector.load %arg3[%c0_5, %c0_6] : memref<16x1xf32, #tpu.memory_space<vmem>>, vector<16x1xf32>
    %13 = vector.broadcast %12 : vector<16x1xf32> to vector<16x128xf32>
    %14 = arith.addf %11, %13 : vector<16x128xf32>
    %cst_7 = arith.constant 0.000000e+00 : f32
    %15 = vector.broadcast %cst_7 : f32 to vector<16x128xf32>
    %16 = arith.maximumf %14, %15 : vector<16x128xf32>
    %c9_i32 = arith.constant 9 : i32
    %17 = tpu.dynamic_rotate %16 by %c9_i32 dim 1 : vector<16x128xf32>, i32 -> vector<16x128xf32>
    %c0_i32 = arith.constant 0 : i32
    %18 = vector.broadcast %c0_i32 : i32 to vector<1x128xi32>
    %19 = arith.cmpi sgt, %6, %18 : vector<1x128xi32>
    %c0_i32_8 = arith.constant 0 : i32
    %20 = vector.broadcast %c0_i32_8 : i32 to vector<1x128xi32>
    %21 = arith.cmpi sgt, %2, %20 : vector<1x128xi32>
    %22 = arith.andi %19, %21 : vector<1x128xi1>
    %cst_9 = arith.constant 0.000000e+00 : f32
    %23 = vector.shape_cast %22 : vector<1x128xi1> to vector<1x128xi1>
    %24 = vector.broadcast %23 : vector<1x128xi1> to vector<16x128xi1>
    %25 = vector.broadcast %cst_9 : f32 to vector<16x128xf32>
    %26 = arith.select %24, %17, %25 : vector<16x128xi1>, vector<16x128xf32>
    %27 = arith.truncf %26 : vector<16x128xf32> to vector<16x128xbf16>
    %c8_i32 = arith.constant 8 : i32
    %28 = tpu.dynamic_rotate %16 by %c8_i32 dim 1 : vector<16x128xf32>, i32 -> vector<16x128xf32>
    %c0_i32_10 = arith.constant 0 : i32
    %29 = vector.broadcast %c0_i32_10 : i32 to vector<1x128xi32>
    %30 = arith.cmpi sgt, %6, %29 : vector<1x128xi32>
    %cst_11 = arith.constant 0.000000e+00 : f32
    %31 = vector.shape_cast %30 : vector<1x128xi1> to vector<1x128xi1>
    %32 = vector.broadcast %31 : vector<1x128xi1> to vector<16x128xi1>
    %33 = vector.broadcast %cst_11 : f32 to vector<16x128xf32>
    %34 = arith.select %32, %28, %33 : vector<16x128xi1>, vector<16x128xf32>
    %35 = arith.truncf %34 : vector<16x128xf32> to vector<16x128xbf16>
    %c7_i32_12 = arith.constant 7 : i32
    %36 = tpu.dynamic_rotate %16 by %c7_i32_12 dim 1 : vector<16x128xf32>, i32 -> vector<16x128xf32>
    %c0_i32_13 = arith.constant 0 : i32
    %37 = vector.broadcast %c0_i32_13 : i32 to vector<1x128xi32>
    %38 = arith.cmpi sgt, %6, %37 : vector<1x128xi32>
    %c7_i32_14 = arith.constant 7 : i32
    %39 = vector.broadcast %c7_i32_14 : i32 to vector<1x128xi32>
    %40 = arith.cmpi slt, %2, %39 : vector<1x128xi32>
    %41 = arith.andi %38, %40 : vector<1x128xi1>
    %cst_15 = arith.constant 0.000000e+00 : f32
    %42 = vector.shape_cast %41 : vector<1x128xi1> to vector<1x128xi1>
    %43 = vector.broadcast %42 : vector<1x128xi1> to vector<16x128xi1>
    %44 = vector.broadcast %cst_15 : f32 to vector<16x128xf32>
    %45 = arith.select %43, %36, %44 : vector<16x128xi1>, vector<16x128xf32>
    %46 = arith.truncf %45 : vector<16x128xf32> to vector<16x128xbf16>
    %c1_i32 = arith.constant 1 : i32
    %47 = tpu.dynamic_rotate %16 by %c1_i32 dim 1 : vector<16x128xf32>, i32 -> vector<16x128xf32>
    %c0_i32_16 = arith.constant 0 : i32
    %48 = vector.broadcast %c0_i32_16 : i32 to vector<1x128xi32>
    %49 = arith.cmpi sgt, %2, %48 : vector<1x128xi32>
    %cst_17 = arith.constant 0.000000e+00 : f32
    %50 = vector.shape_cast %49 : vector<1x128xi1> to vector<1x128xi1>
    %51 = vector.broadcast %50 : vector<1x128xi1> to vector<16x128xi1>
    %52 = vector.broadcast %cst_17 : f32 to vector<16x128xf32>
    %53 = arith.select %51, %47, %52 : vector<16x128xi1>, vector<16x128xf32>
    %54 = arith.truncf %53 : vector<16x128xf32> to vector<16x128xbf16>
    %55 = arith.truncf %16 : vector<16x128xf32> to vector<16x128xbf16>
    %c127_i32 = arith.constant 127 : i32
    %56 = tpu.dynamic_rotate %16 by %c127_i32 dim 1 : vector<16x128xf32>, i32 -> vector<16x128xf32>
    %c7_i32_18 = arith.constant 7 : i32
    %57 = vector.broadcast %c7_i32_18 : i32 to vector<1x128xi32>
    %58 = arith.cmpi slt, %2, %57 : vector<1x128xi32>
    %cst_19 = arith.constant 0.000000e+00 : f32
    %59 = vector.shape_cast %58 : vector<1x128xi1> to vector<1x128xi1>
    %60 = vector.broadcast %59 : vector<1x128xi1> to vector<16x128xi1>
    %61 = vector.broadcast %cst_19 : f32 to vector<16x128xf32>
    %62 = arith.select %60, %56, %61 : vector<16x128xi1>, vector<16x128xf32>
    %63 = arith.truncf %62 : vector<16x128xf32> to vector<16x128xbf16>
    %c121_i32 = arith.constant 121 : i32
    %64 = tpu.dynamic_rotate %16 by %c121_i32 dim 1 : vector<16x128xf32>, i32 -> vector<16x128xf32>
    %c7_i32_20 = arith.constant 7 : i32
    %65 = vector.broadcast %c7_i32_20 : i32 to vector<1x128xi32>
    %66 = arith.cmpi slt, %6, %65 : vector<1x128xi32>
    %c0_i32_21 = arith.constant 0 : i32
    %67 = vector.broadcast %c0_i32_21 : i32 to vector<1x128xi32>
    %68 = arith.cmpi sgt, %2, %67 : vector<1x128xi32>
    %69 = arith.andi %66, %68 : vector<1x128xi1>
    %cst_22 = arith.constant 0.000000e+00 : f32
    %70 = vector.shape_cast %69 : vector<1x128xi1> to vector<1x128xi1>
    %71 = vector.broadcast %70 : vector<1x128xi1> to vector<16x128xi1>
    %72 = vector.broadcast %cst_22 : f32 to vector<16x128xf32>
    %73 = arith.select %71, %64, %72 : vector<16x128xi1>, vector<16x128xf32>
    %74 = arith.truncf %73 : vector<16x128xf32> to vector<16x128xbf16>
    %c120_i32 = arith.constant 120 : i32
    %75 = tpu.dynamic_rotate %16 by %c120_i32 dim 1 : vector<16x128xf32>, i32 -> vector<16x128xf32>
    %c7_i32_23 = arith.constant 7 : i32
    %76 = vector.broadcast %c7_i32_23 : i32 to vector<1x128xi32>
    %77 = arith.cmpi slt, %6, %76 : vector<1x128xi32>
    %cst_24 = arith.constant 0.000000e+00 : f32
    %78 = vector.shape_cast %77 : vector<1x128xi1> to vector<1x128xi1>
    %79 = vector.broadcast %78 : vector<1x128xi1> to vector<16x128xi1>
    %80 = vector.broadcast %cst_24 : f32 to vector<16x128xf32>
    %81 = arith.select %79, %75, %80 : vector<16x128xi1>, vector<16x128xf32>
    %82 = arith.truncf %81 : vector<16x128xf32> to vector<16x128xbf16>
    %c119_i32 = arith.constant 119 : i32
    %83 = tpu.dynamic_rotate %16 by %c119_i32 dim 1 : vector<16x128xf32>, i32 -> vector<16x128xf32>
    %c7_i32_25 = arith.constant 7 : i32
    %84 = vector.broadcast %c7_i32_25 : i32 to vector<1x128xi32>
    %85 = arith.cmpi slt, %6, %84 : vector<1x128xi32>
    %c7_i32_26 = arith.constant 7 : i32
    %86 = vector.broadcast %c7_i32_26 : i32 to vector<1x128xi32>
    %87 = arith.cmpi slt, %2, %86 : vector<1x128xi32>
    %88 = arith.andi %85, %87 : vector<1x128xi1>
    %cst_27 = arith.constant 0.000000e+00 : f32
    %89 = vector.shape_cast %88 : vector<1x128xi1> to vector<1x128xi1>
    %90 = vector.broadcast %89 : vector<1x128xi1> to vector<16x128xi1>
    %91 = vector.broadcast %cst_27 : f32 to vector<16x128xf32>
    %92 = arith.select %90, %83, %91 : vector<16x128xi1>, vector<16x128xf32>
    %93 = arith.truncf %92 : vector<16x128xf32> to vector<16x128xbf16>
    %94 = tpu.concatenate %27, %35, %46, %54, %55, %63, %74, %82, %93 in 0 : vector<16x128xbf16>, vector<16x128xbf16>, vector<16x128xbf16>, vector<16x128xbf16>, vector<16x128xbf16>, vector<16x128xbf16>, vector<16x128xbf16>, vector<16x128xbf16>, vector<16x128xbf16> -> vector<144x128xbf16>
    %c0_28 = arith.constant 0 : index
    %c0_29 = arith.constant 0 : index
    %95 = vector.load %arg4[%c0_28, %c0_29] : memref<16x144xbf16, #tpu.memory_space<vmem>>, vector<16x144xbf16>
    %cst_30 = arith.constant dense<0.000000e+00> : vector<16x128xf32>
    %96 = tpu.matmul %95, %94, %cst_30 {dimension_numbers = #tpu.dot_dimension_numbers<[1], [0], [0], [1], [0, 0, 1, 1], [], []>} : vector<16x144xbf16>, vector<144x128xbf16>, vector<16x128xf32> -> vector<16x128xf32>
    %c0_31 = arith.constant 0 : index
    %c0_32 = arith.constant 0 : index
    %97 = vector.load %arg5[%c0_31, %c0_32] : memref<16x1xf32, #tpu.memory_space<vmem>>, vector<16x1xf32>
    %98 = vector.broadcast %97 : vector<16x1xf32> to vector<16x128xf32>
    %99 = arith.addf %96, %98 : vector<16x128xf32>
    %cst_33 = arith.constant 0.000000e+00 : f32
    %100 = vector.broadcast %cst_33 : f32 to vector<4x128xf32>
    %cst_34 = arith.constant 0.000000e+00 : f32
    %101 = vector.broadcast %cst_34 : f32 to vector<4x128xf32>
    %102 = tpu.concatenate %100, %9, %101 in 0 : vector<4x128xf32>, vector<8x128xf32>, vector<4x128xf32> -> vector<16x128xf32>
    %103 = arith.addf %99, %102 : vector<16x128xf32>
    %cst_35 = arith.constant 0.000000e+00 : f32
    %104 = vector.broadcast %cst_35 : f32 to vector<16x128xf32>
    %105 = arith.maximumf %103, %104 : vector<16x128xf32>
    %c0_36 = arith.constant 0 : index
    %c0_37 = arith.constant 0 : index
    %106 = vector.load %arg6[%c0_36, %c0_37] : memref<16x128xf32, #tpu.memory_space<vmem>>, vector<16x128xf32>
    tpu.vector_store %arg6[%c0_36, %c0_37], %105 {strides = array<i32>} : memref<16x128xf32, #tpu.memory_space<vmem>>, vector<16x128xf32>,
    return
  }
  func.func @transform_0(%arg0: i32) -> (i32, i32) {
    %c0_i32 = arith.constant 0 : i32
    %c0_i32_0 = arith.constant 0 : i32
    return %c0_i32, %arg0 : i32, i32
  }
  func.func @transform_1(%arg0: i32) -> (i32, i32) {
    %c0_i32 = arith.constant 0 : i32
    %c0_i32_0 = arith.constant 0 : i32
    %c0_i32_1 = arith.constant 0 : i32
    return %c0_i32, %c0_i32_0 : i32, i32
  }
  func.func @transform_2(%arg0: i32) -> (i32, i32) {
    %c0_i32 = arith.constant 0 : i32
    %c0_i32_0 = arith.constant 0 : i32
    %c0_i32_1 = arith.constant 0 : i32
    return %c0_i32, %c0_i32_0 : i32, i32
  }
  func.func @transform_3(%arg0: i32) -> (i32, i32) {
    %c0_i32 = arith.constant 0 : i32
    %c0_i32_0 = arith.constant 0 : i32
    %c0_i32_1 = arith.constant 0 : i32
    return %c0_i32, %c0_i32_0 : i32, i32
  }
  func.func @transform_4(%arg0: i32) -> (i32, i32) {
    %c0_i32 = arith.constant 0 : i32
    %c0_i32_0 = arith.constant 0 : i32
    %c0_i32_1 = arith.constant 0 : i32
    return %c0_i32, %c0_i32_0 : i32, i32
  }
  func.func @transform_5(%arg0: i32) -> (i32, i32) {
    %c0_i32 = arith.constant 0 : i32
    %c0_i32_0 = arith.constant 0 : i32
    return %c0_i32, %arg0 : i32, i32
  }
}

</mosaic_0001>

<bundles_post_ra>
// kernel: a_call__.1
= control target key start
LH: loop header
LB: loop body
LE: loop exit
PB: predicated region body
PF: predicated region fallthrough
CT: control target
= control target key end

     0   :  { %v410_v2 = vmov 0   ;;  %vm87_vm0 = vcmask 1043456   ;;  %vm83_vm1 = vcmask 588800   ;;  %s413_s11 = smov 120   ;;  %s415_s12 = smov 1   ;;  %v21_v31 = vlaneseq  ;;  %s563_s0 = inlined_call_operand.vmem [shape: bf16[72,128], index: 0, kind: input, shape index: {}]   ;;  %s564_s2 = inlined_call_operand.vmem [shape: f32[16,1], index: 2, kind: input, shape index: {}]   ;;  %s565_s1 = inlined_call_operand.vmem [shape: bf16[16,72], index: 1, kind: input, shape index: {}]   ;;  %s566_s3 = inlined_call_operand.vmem [shape: bf16[16,144], index: 3, kind: input, shape index: {}]   ;;  %s567_s4 = inlined_call_operand.vmem [shape: f32[16,1], index: 4, kind: input, shape index: {}]   ;;  %s568_s5 = inlined_call_operand.vmem [shape: f32[16,128], index: 5, kind: output, shape index: {}]  }
   0x1   :  { %v34_v0 = vld [vmem:[%s563_s0 + $0x20] sm:$0xf]  ;;  %v35_v1 = vld [vmem:[%s563_s0 + $0x10] sm:$0xf]  ;;  %367 = vset.pattern.permute.xlu0 %v410_v2  ;;  %408 = vset.pattern.permute.xlu1 %v410_v2  ;;  %v354_v11 = vld [vmem:[%s563_s0 + $0x18] sm:$0xff]  ;;  %s416_s13 = smov 121  }
   0x2   :  { %v36_v3 = vunpack.c.l.bf16 %v35_v1  ;;  %v73_v4 = vunpack.c.l.b16 %v34_v0  ;;  %409 = vset.pattern.permute.xlu2 %v410_v2  ;;  %v39_v5 = vld [vmem:[%s564_s2] sm:$0xff]  ;;  %v40_v12 = vld [vmem:[%s564_s2 + $0x8] sm:$0xff]  ;;  %v353_v13 = vld [vmem:[%s563_s0 + $0x10] sm:$0xff]  ;;  %s411_s2 = smov 7   ;;  %s417_s14 = smov 119   ;;  %v22_v33 = vand.u32 127, %v21_v31 }
   0x3   :  { %43 = vperm.xlu0 %367, %v39_v5   ;;  %v352_v14 = vld [vmem:[%s563_s0 + $0x8] sm:$0xff]  ;;  %v351_v15 = vld [vmem:[%s563_s0] sm:$0xff]  ;;  %s412_s0 = smov 127   ;;  %s418_s15 = smov 8   ;;  %vm274_vm5 = vcmask 130048  }
   0x4   :  { %v78_v6 = vpack.c.b16 %v73_v4, %v73_v4  ;;  %v307_v7 = vrot.slane %v36_v3, 4  ;;  %v355_v16 = vld [vmem:[%s565_s1] sm:$0xff]  ;;  %s414_s1 = smov 9   ;;  %v24_v34 = vshra.s32 %v22_v33, 3  ;;  %v23_v37 = vand.u32 7, %v22_v33 }
   0x5   :  { %v356_v48 = vld [vmem:[%s566_s3 + $0x4] sm:$0xf]  ;;  %v346_v49 = vld [vmem:[%s566_s3 + $0x8] sm:$0xf0] }
   0x6   :  { %v89_v8 = vsel %vm87_vm0, %v78_v6, 0  ;;  %v458_v9 = vsel %vm87_vm0, 0.0, %v307_v7  ;;  %v460_v10 = vsel %vm87_vm0, %v307_v7, 0.0  ;;  %v488_v36 = vand.u32 7, %v24_v34 }
   0x7   :  { %94 = vmatpush.bf16.msra.mxu0 %v89_v8  ;;  %vm491_vm3 = vcmp.lt.s32.totalorder %v23_v37, 7  ;;  %v349_v52 = vor.u32 %v356_v48, %v346_v49  ;;  %vm509_vm6 = vcmp.gt.s32.totalorder %v23_v37, 0 }
   0x8   :  { %vm168_vm2 = vcmp.lt.s32.totalorder %v488_v36, 7  ;;  %vm111_vm8 = vcmp.gt.s32.totalorder %v488_v36, 0 }
   0x9   :  { %vm190_vm4 = vmand %vm168_vm2, %vm491_vm3 }
   0xa   :  { %vm169_vm7 = vmand %vm168_vm2, %vm509_vm6 }
   0xb   :  { %95 = vmatpush.bf16.msra.mxu0 %v354_v11  ;;  %48 = vperm.xlu0 %367, %v40_v12   ;;  %vm135_vm9 = vmand %vm111_vm8, %vm491_vm3 }
   0xc   :  { %vm113_vm10 = vmand %vm111_vm8, %vm509_vm6 }
   0xf   :  { %96 = vmatpush.bf16.msra.mxu0 %v353_v13 }
  0x13   :  { %97 = vmatpush.bf16.msra.mxu0 %v352_v14 }
  0x17   :  { %98 = vmatpush.bf16.msra.mxu0 %v351_v15 }
  0x1a   :  { %341 = vmatmul.msk.bf16.vlgmr.msra.gmra.mxu0 %vm83_vm1, %v355_v16 }
  0x75   :  { %v44_v17 = vpop.permute.xlu0 %43 }
  0x7d   :  { %v49_v20 = vpop.permute.xlu0 %48 }
  0x97   :  { %v100_v18 = vpop.f32.mrf.mxu0 }
  0x98   :  { %v101_v19 = vadd.f32 %v100_v18, %v44_v17  ;;  %v253_v17 = vld [vmem:[%s567_s4] sm:$0xff]  ;;  %v254_v18 = vld [vmem:[%s567_s4 + $0x8] sm:$0xff] }
  0x9a   :  { %v105_v22 = vmax.f32 %v101_v19, 0.0 }
  0x9c   :  { %v152_v26 = vpack.c.bf16 %v105_v22, %v105_v22 }
  0x9e   :  { %v480_v28 = vunpack.c.l.b16 %v152_v26 }
  0x9f   :  { %v102_v21 = vpop.f32.mrf.mxu0 }
  0xa0   :  { %v103_v23 = vadd.f32 %v102_v21, %v49_v20 }
  0xa2   :  { %v106_v24 = vmax.f32 %v103_v23, 0.0 }
  0xa4   :  { %v388_v25 = vpack.i.bf16 %v106_v24, %v105_v22  ;;  %v153_v27 = vpack.c.bf16 %v106_v24, %v106_v24 }
  0xa6   :  { %389 = vrot.lane.b32.xlu0 %v388_v25, %s411_s2  ;;  %379 = vrot.lane.b32.xlu2 %v388_v25, %s412_s0  ;;  %v482_v29 = vunpack.c.l.b16 %v153_v27 }
  0xa7   :  { %369 = vrot.lane.b32.xlu1 %v388_v25, %s413_s11 }
  0xa8   :  { %v225_v30 = vpack.c.b16 %v482_v29, %v480_v28  ;;  %v344_v28 = vld [vmem:[%s566_s3] sm:$0xf]  ;;  %v357_v29 = vld [vmem:[%s566_s3 + $0x4] sm:$0xf0] }
  0xa9   :  { %v345_v63 = vor.u32 %v357_v29, %v344_v28 }
  0xae   :  { %404 = vrot.lane.b32.xlu0 %v388_v25, %s414_s1  ;;  %384 = vrot.lane.b32.xlu2 %v388_v25, %s415_s12 }
  0xaf   :  { %374 = vrot.lane.b32.xlu1 %v388_v25, %s416_s13 }
  0xb6   :  { %399 = vrot.lane.b32.xlu2 %v388_v25, %s417_s14 }
  0xb7   :  { %394 = vrot.lane.b32.xlu1 %v388_v25, %s418_s15 }
  0xbe   :  { %262 = vperm.xlu2 %409, %v254_v18  }
  0xbf   :  { %257 = vperm.xlu1 %408, %v253_v17  }
 0x100   :  { %v380_v32 = vpop.permute.xlu2 %379 }
 0x101   :  { %v382_v57 = vunpack.i.h.bf16 %v380_v32  ;;  %v381_v58 = vunpack.i.l.bf16 %v380_v32 }
 0x103   :  { %v161_v0 = vsel %vm491_vm3, %v382_v57, 0.0  ;;  %v160_v1 = vsel %vm491_vm3, %v381_v58, 0.0 }
 0x104   :  { %v162_v8 = vpack.c.bf16 %v160_v1, %v160_v1  ;;  %v163_v11 = vpack.c.bf16 %v161_v0, %v161_v0 }
 0x106   :  { %v229_v21 = vunpack.c.l.b16 %v162_v8  ;;  %v230_v22 = vunpack.c.l.b16 %v163_v11 }
 0x108   :  { %v486_v35 = vpop.permute.xlu2 %384  ;;  %v231_v32 = vpack.c.b16 %v230_v22, %v229_v21 }
 0x109   :  { %v387_v15 = vunpack.i.h.bf16 %v486_v35  ;;  %v386_v16 = vunpack.i.l.bf16 %v486_v35 }
 0x10b   :  { %v149_v26 = vsel %vm509_vm6, %v387_v15, 0.0  ;;  %v148_v27 = vsel %vm509_vm6, %v386_v16, 0.0 }
 0x10c   :  { %v150_v35 = vpack.c.bf16 %v148_v27, %v148_v27  ;;  %v151_v37 = vpack.c.bf16 %v149_v26, %v149_v26 }
 0x110   :  { %v400_v39 = vpop.permute.xlu2 %399 }
 0x111   :  { %v402_v40 = vunpack.i.h.bf16 %v400_v39  ;;  %v401_v41 = vunpack.i.l.bf16 %v400_v39 }
 0x113   :  { %v193_v42 = vsel %vm190_vm4, %v401_v41, 0.0  ;;  %v194_v43 = vsel %vm190_vm4, %v402_v40, 0.0 }
 0x114   :  { %v195_v44 = vpack.c.bf16 %v193_v42, %v193_v42  ;;  %v196_v45 = vpack.c.bf16 %v194_v43, %v194_v43 }
 0x116   :  { %v247_v46 = vunpack.c.l.b16 %v195_v44  ;;  %v248_v47 = vunpack.c.l.b16 %v196_v45  ;;  %v217_v44 = vunpack.c.l.b16 %v150_v35  ;;  %v218_v45 = vunpack.c.l.b16 %v151_v37 }
 0x118   :  { %v249_v50 = vpack.c.b16 %v248_v47, %v247_v46  ;;  %v390_v12 = vpop.permute.xlu0 %389 }
 0x119   :  { %v370_v51 = vpop.permute.xlu1 %369  ;;  %v392_v23 = vunpack.i.h.bf16 %v390_v12  ;;  %v391_v24 = vunpack.i.l.bf16 %v390_v12 }
 0x11a   :  { %v372_v53 = vunpack.i.h.bf16 %v370_v51  ;;  %v371_v54 = vunpack.i.l.bf16 %v370_v51  ;;  %299 = vmatpush.bf16.msra.mxu2 %v249_v50  ;;  %v219_v51 = vpack.c.b16 %v218_v45, %v217_v44 }
 0x11b   :  { %v139_v33 = vsel %vm135_vm9, %v392_v23, 0.0  ;;  %v138_v34 = vsel %vm135_vm9, %v391_v24, 0.0 }
 0x11c   :  { %v182_v55 = vsel %vm168_vm2, %v371_v54, 0.0  ;;  %v183_v56 = vsel %vm168_vm2, %v372_v53, 0.0  ;;  %v140_v42 = vpack.c.bf16 %v138_v34, %v138_v34  ;;  %v141_v43 = vpack.c.bf16 %v139_v33, %v139_v33 }
 0x11d   :  { %v184_v59 = vpack.c.bf16 %v182_v55, %v182_v55  ;;  %v185_v60 = vpack.c.bf16 %v183_v56, %v183_v56  ;;  %350 = vmatmul.msk.bf16.vlgmr.msra.gmra.mxu2 %vm274_vm5, %v349_v52 }
 0x11e   :  { %v211_v49 = vunpack.c.l.b16 %v140_v42  ;;  %v212_v50 = vunpack.c.l.b16 %v141_v43 }
 0x11f   :  { %v241_v61 = vunpack.c.l.b16 %v184_v59  ;;  %v242_v62 = vunpack.c.l.b16 %v185_v60 }
 0x120   :  { %v405_v41 = vpop.permute.xlu0 %404  ;;  %v213_v56 = vpack.c.b16 %v212_v50, %v211_v49 }
 0x121   :  { %v375_v2 = vpop.permute.xlu1 %374  ;;  %v243_v3 = vpack.c.b16 %v242_v62, %v241_v61  ;;  %v407_v46 = vunpack.i.h.bf16 %v405_v41  ;;  %v406_v38 = vunpack.i.l.bf16 %v405_v41 }
 0x122   :  { %v377_v4 = vunpack.i.h.bf16 %v375_v2  ;;  %v376_v5 = vunpack.i.l.bf16 %v375_v2 }
 0x123   :  { %278 = vmatpush.bf16.msra.mxu1 %v243_v3  ;;  %v117_v54 = vsel %vm113_vm10, %v407_v46, 0.0  ;;  %v116_v55 = vsel %vm113_vm10, %v406_v38, 0.0 }
 0x124   :  { %v173_v6 = vsel %vm169_vm7, %v377_v4, 0.0  ;;  %v172_v7 = vsel %vm169_vm7, %v376_v5, 0.0  ;;  %v119_v57 = vpack.c.bf16 %v117_v54, %v117_v54  ;;  %v118_v58 = vpack.c.bf16 %v116_v55, %v116_v55 }
 0x125   :  { %v174_v13 = vpack.c.bf16 %v172_v7, %v172_v7  ;;  %v175_v14 = vpack.c.bf16 %v173_v6, %v173_v6  ;;  %v263_v6 = vpop.permute.xlu2 %262 }
 0x126   :  { %v200_v36 = vunpack.c.l.b16 %v119_v57  ;;  %v199_v61 = vunpack.c.l.b16 %v118_v58 }
 0x127   :  { %v235_v19 = vunpack.c.l.b16 %v174_v13  ;;  %v236_v20 = vunpack.c.l.b16 %v175_v14 }
 0x129   :  { %v237_v25 = vpack.c.b16 %v236_v20, %v235_v19  ;;  %v395_v31 = vpop.permute.xlu1 %394 }
 0x12a   :  { %v397_v39 = vunpack.i.h.bf16 %v395_v31  ;;  %v396_v40 = vunpack.i.l.bf16 %v395_v31 }
 0x12b   :  { %279 = vmatpush.bf16.msra.mxu1 %v237_v25 }
 0x12c   :  { %v127_v47 = vsel %vm111_vm8, %v397_v39, 0.0  ;;  %v126_v48 = vsel %vm111_vm8, %v396_v40, 0.0 }
 0x12d   :  { %v128_v52 = vpack.c.bf16 %v126_v48, %v126_v48  ;;  %v129_v53 = vpack.c.bf16 %v127_v47, %v127_v47 }
 0x12f   :  { %280 = vmatpush.bf16.msra.mxu1 %v231_v32  ;;  %v205_v59 = vunpack.c.l.b16 %v128_v52  ;;  %v206_v60 = vunpack.c.l.b16 %v129_v53 }
 0x131   :  { %v207_v62 = vpack.c.b16 %v206_v60, %v205_v59  ;;  %v258_v0 = vpop.permute.xlu1 %257 }
 0x133   :  { %281 = vmatpush.bf16.msra.mxu1 %v225_v30  ;;  %v201_v30 = vpack.c.b16 %v200_v36, %v199_v61 }
 0x137   :  { %282 = vmatpush.bf16.msra.mxu1 %v219_v51 }
 0x13b   :  { %283 = vmatpush.bf16.msra.mxu1 %v213_v56 }
 0x13f   :  { %284 = vmatpush.bf16.msra.mxu1 %v207_v62 }
 0x143   :  { %285 = vmatpush.bf16.msra.mxu1 %v201_v30 }
 0x146   :  { %286 = vmatmul.bf16.vlgmr.msra.gmra.mxu1 %v345_v63 }
 0x1a0   :  { %v301_v1 = vpop.f32.mrf.mxu2 }
 0x1a8   :  { %v303_v12 = vpop.f32.mrf.mxu2 }
 0x1c3   :  { %v287_v2 = vpop.f32.mrf.mxu1 }
 0x1c4   :  { %v288_v3 = vadd.f32 %v287_v2, %v258_v0 }
 0x1c6   :  { %v302_v4 = vadd.f32 %v301_v1, %v288_v3 }
 0x1c8   :  { %v311_v5 = vadd.f32 %v458_v9, %v302_v4 }
 0x1ca   :  { %v313_v7 = vmax.f32 %v311_v5, 0.0 }
 0x1cb   :  { %v289_v8 = vpop.f32.mrf.mxu1 }
 0x1cc   :  { %315 = vst [vmem:[%s568_s5] sm:$0xff] %v313_v7  ;;  %v290_v11 = vadd.f32 %v289_v8, %v263_v6 }
 0x1ce   :  { %v304_v13 = vadd.f32 %v303_v12, %v290_v11 }
 0x1d0   :  { %v312_v14 = vadd.f32 %v460_v10, %v304_v13 }
 0x1d2   :  { %v314_v15 = vmax.f32 %v312_v14, 0.0 }
 0x1d4   :  { %316 = vst [vmem:[%s568_s5 + $0x8] sm:$0xff] %v314_v15 }

</bundles_post_ra>
